<compile_context>
chip_gen: v6e
topology: v6e:2x2x1
jax: 0.10.0
libtpu: 0.0.40
codegen_flags: <defaults>
</compile_context>

<pallas_src>
import jax
import jax.numpy as jnp
from jax.experimental import pallas as pl
from jax.experimental.pallas import tpu as pltpu

LANE = 128            # vreg lane width
ROW_ALIGN = 16        # covers both f32 (8,128) and bf16 (16,128) native tiles
_MEGACORE_MIN_BATCH = 2048   # past this, split batch into >=2 programs (v7x 2 TCs)


def _round_up(n, m):
    return ((n + m - 1) // m) * m


def _pad2d(a, rows, cols):
    return jnp.pad(a, ((0, rows - a.shape[0]), (0, cols - a.shape[1])))


def _mlp_kernel(x_ref, w1_ref, b1_ref, w2_ref, b2_ref, o_ref):
    # x : (tb, in_dim) f32  (unpadded feature axis; cast in-kernel)
    # w1: (in_dim, h_p) compute dtype;  b1: (1, h_p)  f32
    # w2: (h_p, out_p)  compute dtype;  b2: (1, out_p) f32
    # o : (tb, out_p)   bf16 (lane-dense store)
    x = x_ref[...].astype(w1_ref.dtype)                    # VPU cast, hidden under DMA
    h = jnp.dot(x, w1_ref[...], preferred_element_type=jnp.float32)
    h = jnp.maximum(h + b1_ref[...], 0.0)                  # bias + ReLU in f32
    h = h.astype(w2_ref.dtype)                             # back to MXU input dtype
    o = jnp.dot(h, w2_ref[...], preferred_element_type=jnp.float32)
    o_ref[...] = (o + b2_ref[...]).astype(o_ref.dtype)


def prepare_params(w1, b1, w2, b2, *, compute_dtype=jnp.bfloat16):
    """Pad + cast parameters ONCE (per parameter update), not per forward.

    Weights are stored (in, out) — transposed vs PyTorch's (out, in) — so the
    kernel computes x @ W + b directly.  Hidden/output feature axes are
    zero-padded to 128 lanes so both matmuls are aligned MXU tiles and the
    output store is lane-dense.  Zero padding does not change the result.
    """
    in_dim, hid = w1.shape
    out_dim = w2.shape[1]
    h_p = _round_up(hid, LANE)
    out_p = _round_up(out_dim, LANE)
    return {
        "in_dim": in_dim,
        "out_dim": out_dim,
        "w1": _pad2d(w1, in_dim, h_p).astype(compute_dtype),
        "b1": _pad2d(b1.reshape(1, -1), 1, h_p).astype(jnp.float32),
        "w2": _pad2d(w2, h_p, out_p).astype(compute_dtype),
        "b2": _pad2d(b2.reshape(1, -1), 1, out_p).astype(jnp.float32),
    }


def network_forward(x, params, *, block_b=2048, out_dtype=jnp.float32):
    """forward(s) = Linear2(relu(Linear1(s))).  x: (B, input_dim) f32."""
    B, in_dim = x.shape
    assert in_dim == params["in_dim"]
    w1, b1, w2, b2 = params["w1"], params["b1"], params["w2"], params["b2"]
    h_p = w1.shape[1]
    out_p = w2.shape[1]
    out_dim = params["out_dim"]

    # Batch tiling: big tiles (per-step pipeline overhead ~0.35us dominates at
    # tiny tiles).  Whole batch in one program up to block_b rows; for very
    # large batches cap the tile so the "parallel" grid has >= 2 programs and
    # both v7x TensorCores get work.
    tb = min(block_b, _round_up(B, ROW_ALIGN))
    if B >= _MEGACORE_MIN_BATCH and pl.cdiv(B, tb) < 2:
        tb = _round_up(pl.cdiv(B, 2), ROW_ALIGN)
    tb = _round_up(tb, ROW_ALIGN)
    grid_b = pl.cdiv(B, tb)
    b_pad = grid_b * tb

    # Only row-pad when B isn't a tile multiple (at most ROW_ALIGN-1 rows);
    # never column-pad or dtype-cast x in the wrapper.
    x_in = x if b_pad == B else jnp.pad(x, ((0, b_pad - B), (0, 0)))

    out = pl.pallas_call(
        _mlp_kernel,
        out_shape=jax.ShapeDtypeStruct((b_pad, out_p), jnp.bfloat16),
        grid=(grid_b,),
        in_specs=[
            # Activations: tiled over batch, unpadded feature axis (== full dim).
            pl.BlockSpec((tb, in_dim), lambda i: (i, 0)),
            # Weights / biases: constant index_map -> stay VMEM-resident.
            pl.BlockSpec((in_dim, h_p), lambda i: (0, 0)),
            pl.BlockSpec((1, h_p), lambda i: (0, 0)),
            pl.BlockSpec((h_p, out_p), lambda i: (0, 0)),
            pl.BlockSpec((1, out_p), lambda i: (0, 0)),
        ],
        out_specs=pl.BlockSpec((tb, out_p), lambda i: (i, 0)),
        compiler_params=pltpu.CompilerParams(
            # Parallel batch axis: double-buffered activation DMA; on v7x the
            # batch axis can be sharded across both TensorCores.
            dimension_semantics=("parallel",),
        ),
    )(x_in, w1, b1, w2, b2)

    return out[:B, :out_dim].astype(out_dtype)


def xavier_uniform(key, fan_in, fan_out, dtype=jnp.float32):
    # Matches torch.nn.init.xavier_uniform_ (gain=1.0)
    limit = jnp.sqrt(6.0 / (fan_in + fan_out))
    return jax.random.uniform(key, (fan_in, fan_out), dtype, -limit, limit)


def linear_bias_init(key, fan_in, fan_out, dtype=jnp.float32):
    # Matches PyTorch default nn.Linear bias init: U(-1/sqrt(fan_in), 1/sqrt(fan_in))
    bound = 1.0 / jnp.sqrt(jnp.array(fan_in, dtype))
    return jax.random.uniform(key, (fan_out,), dtype, -bound, bound)


if __name__ == "__main__":
    # Small DQN-head shapes; batch chosen so the tiled path (grid of 2) can
    # also be exercised with block_b=128.
    input_dim, hidden_dim, output_dim = 16, 32, 4
    batch = 256

    key = jax.random.PRNGKey(0)
    k_x, k_w1, k_b1, k_w2, k_b2 = jax.random.split(key, 5)

    x = jax.random.normal(k_x, (batch, input_dim), jnp.float32)
    # Weights stored as (in, out) — transpose of PyTorch's (out, in) convention.
    w1 = xavier_uniform(k_w1, input_dim, hidden_dim)
    b1 = linear_bias_init(k_b1, input_dim, hidden_dim)
    w2 = xavier_uniform(k_w2, hidden_dim, output_dim)
    b2 = linear_bias_init(k_b2, hidden_dim, output_dim)

    # Pad/cast weights once (per parameter update), not per forward call.
    params = prepare_params(w1, b1, w2, b2)

    out = network_forward(x, params)                      # whole batch, grid of 1
    out_tiled = network_forward(x, params, block_b=128)   # grid of 2 (tiling path)
    jax.block_until_ready(out)
    jax.block_until_ready(out_tiled)
    assert out.shape == (batch, output_dim)
    assert jnp.allclose(out, out_tiled, atol=1e-6, rtol=0.0)

    # Reference 1: same bf16-input / f32-accumulate / bf16-store math as the kernel.
    xb, w1b, w2b = (a.astype(jnp.bfloat16) for a in (x, w1, w2))
    h_ref = jnp.maximum(
        jnp.dot(xb, w1b, preferred_element_type=jnp.float32) + b1, 0.0
    ).astype(jnp.bfloat16)
    ref_q = jnp.dot(h_ref, w2b, preferred_element_type=jnp.float32) + b2
    ref_q = ref_q.astype(jnp.bfloat16).astype(jnp.float32)
    assert jnp.allclose(out, ref_q, atol=2e-2, rtol=2e-2)

    # Reference 2: pure f32 semantics of the PyTorch module (loose tolerance
    # accounts for bf16 quantization of matmul inputs and the bf16 output store).
    # TODO(synk): if this forward is reused inside training/target computation,
    # pass compute_dtype=jnp.float32 to prepare_params for full-precision math.
    ref_f32 = jnp.maximum(x @ w1 + b1, 0.0) @ w2 + b2
    assert jnp.allclose(out, ref_f32, atol=1e-1, rtol=1e-1)

    print("KERNEL_OK")
</pallas_src>

<mosaic_0001>
module attributes {stable_mosaic.version = 11 : i64} {
  func.func @_mlp_kernel(%arg0: i32, %arg1: memref<256x16xf32, #tpu.memory_space<vmem>>, %arg2: memref<16x128xbf16, #tpu.memory_space<vmem>>, %arg3: memref<1x128xf32, #tpu.memory_space<vmem>>, %arg4: memref<128x128xbf16, #tpu.memory_space<vmem>>, %arg5: memref<1x128xf32, #tpu.memory_space<vmem>>, %arg6: memref<256x128xbf16, #tpu.memory_space<vmem>>) attributes {dimension_semantics = [#tpu.dimension_semantics<parallel>], iteration_bounds = array<i64: 1>, scalar_prefetch = 0 : i64, scratch_operands = 0 : i64, tpu.core_type = #tpu.core_type<tc>, window_params = [{transform_indices = @transform_0, window_bounds = array<i64: 256, 16>}, {pipeline_mode = #tpu.pipeline_mode<synchronous>, transform_indices = @transform_1, window_bounds = array<i64: 16, 128>}, {pipeline_mode = #tpu.pipeline_mode<synchronous>, transform_indices = @transform_2, window_bounds = array<i64: 1, 128>}, {pipeline_mode = #tpu.pipeline_mode<synchronous>, transform_indices = @transform_3, window_bounds = array<i64: 128, 128>}, {pipeline_mode = #tpu.pipeline_mode<synchronous>, transform_indices = @transform_4, window_bounds = array<i64: 1, 128>}, {transform_indices = @transform_5, window_bounds = array<i64: 256, 128>}]} {
    %c0 = arith.constant 0 : index
    %c0_0 = arith.constant 0 : index
    %0 = vector.load %arg1[%c0, %c0_0] : memref<256x16xf32, #tpu.memory_space<vmem>>, vector<256x16xf32>
    %1 = arith.truncf %0 : vector<256x16xf32> to vector<256x16xbf16>
    %c0_1 = arith.constant 0 : index
    %c0_2 = arith.constant 0 : index
    %2 = vector.load %arg2[%c0_1, %c0_2] : memref<16x128xbf16, #tpu.memory_space<vmem>>, vector<16x128xbf16>
    %cst = arith.constant dense<0.000000e+00> : vector<256x128xf32>
    %3 = tpu.matmul %1, %2, %cst {dimension_numbers = #tpu.dot_dimension_numbers<[1], [0], [0], [1], [0, 0, 1, 1], [], []>} : vector<256x16xbf16>, vector<16x128xbf16>, vector<256x128xf32> -> vector<256x128xf32>
    %c0_3 = arith.constant 0 : index
    %c0_4 = arith.constant 0 : index
    %4 = vector.load %arg3[%c0_3, %c0_4] : memref<1x128xf32, #tpu.memory_space<vmem>>, vector<1x128xf32>
    %5 = vector.broadcast %4 : vector<1x128xf32> to vector<256x128xf32>
    %6 = arith.addf %3, %5 : vector<256x128xf32>
    %cst_5 = arith.constant 0.000000e+00 : f32
    %7 = vector.broadcast %cst_5 : f32 to vector<256x128xf32>
    %8 = arith.maximumf %6, %7 : vector<256x128xf32>
    %9 = arith.truncf %8 : vector<256x128xf32> to vector<256x128xbf16>
    %c0_6 = arith.constant 0 : index
    %c0_7 = arith.constant 0 : index
    %10 = vector.load %arg4[%c0_6, %c0_7] : memref<128x128xbf16, #tpu.memory_space<vmem>>, vector<128x128xbf16>
    %cst_8 = arith.constant dense<0.000000e+00> : vector<256x128xf32>
    %11 = tpu.matmul %9, %10, %cst_8 {dimension_numbers = #tpu.dot_dimension_numbers<[1], [0], [0], [1], [0, 0, 1, 1], [], []>} : vector<256x128xbf16>, vector<128x128xbf16>, vector<256x128xf32> -> vector<256x128xf32>
    %c0_9 = arith.constant 0 : index
    %c0_10 = arith.constant 0 : index
    %12 = vector.load %arg5[%c0_9, %c0_10] : memref<1x128xf32, #tpu.memory_space<vmem>>, vector<1x128xf32>
    %13 = vector.broadcast %12 : vector<1x128xf32> to vector<256x128xf32>
    %14 = arith.addf %11, %13 : vector<256x128xf32>
    %15 = arith.truncf %14 : vector<256x128xf32> to vector<256x128xbf16>
    %c0_11 = arith.constant 0 : index
    %c0_12 = arith.constant 0 : index
    %16 = vector.load %arg6[%c0_11, %c0_12] : memref<256x128xbf16, #tpu.memory_space<vmem>>, vector<256x128xbf16>
    tpu.vector_store %arg6[%c0_11, %c0_12], %15 {strides = array<i32>} : memref<256x128xbf16, #tpu.memory_space<vmem>>, vector<256x128xbf16>,
    return
  }
  func.func @transform_0(%arg0: i32) -> (i32, i32) {
    %c0_i32 = arith.constant 0 : i32
    %c0_i32_0 = arith.constant 0 : i32
    return %arg0, %c0_i32 : i32, i32
  }
  func.func @transform_1(%arg0: i32) -> (i32, i32) {
    %c0_i32 = arith.constant 0 : i32
    %c0_i32_0 = arith.constant 0 : i32
    %c0_i32_1 = arith.constant 0 : i32
    return %c0_i32, %c0_i32_0 : i32, i32
  }
  func.func @transform_2(%arg0: i32) -> (i32, i32) {
    %c0_i32 = arith.constant 0 : i32
    %c0_i32_0 = arith.constant 0 : i32
    %c0_i32_1 = arith.constant 0 : i32
    return %c0_i32, %c0_i32_0 : i32, i32
  }
  func.func @transform_3(%arg0: i32) -> (i32, i32) {
    %c0_i32 = arith.constant 0 : i32
    %c0_i32_0 = arith.constant 0 : i32
    %c0_i32_1 = arith.constant 0 : i32
    return %c0_i32, %c0_i32_0 : i32, i32
  }
  func.func @transform_4(%arg0: i32) -> (i32, i32) {
    %c0_i32 = arith.constant 0 : i32
    %c0_i32_0 = arith.constant 0 : i32
    %c0_i32_1 = arith.constant 0 : i32
    return %c0_i32, %c0_i32_0 : i32, i32
  }
  func.func @transform_5(%arg0: i32) -> (i32, i32) {
    %c0_i32 = arith.constant 0 : i32
    %c0_i32_0 = arith.constant 0 : i32
    return %arg0, %c0_i32 : i32, i32
  }
}

</mosaic_0001>

<bundles_post_ra>
// kernel: tpu_custom_call.1
= control target key start
LH: loop header
LB: loop body
LE: loop exit
PB: predicated region body
PF: predicated region fallthrough
CT: control target
= control target key end

     0   :  { %vm85_vm0 = vcmask 130048   ;;  %s1359_s0 = inlined_call_operand.vmem [shape: f32[256,16], index: 0, kind: input, shape index: {}]   ;;  %s1360_s1 = inlined_call_operand.vmem [shape: bf16[16,128], index: 1, kind: input, shape index: {}]   ;;  %s1361_s2 = inlined_call_operand.vmem [shape: f32[1,128], index: 2, kind: input, shape index: {}]   ;;  %s1362_s3 = inlined_call_operand.vmem [shape: bf16[128,128], index: 3, kind: input, shape index: {}]   ;;  %s1363_s4 = inlined_call_operand.vmem [shape: f32[1,128], index: 4, kind: input, shape index: {}]   ;;  %s1364_s5 = inlined_call_operand.hbm [shape: bf16[256,128], index: 5, kind: output, shape index: {}]  }
   0x1   :  { %v1079_v0 = vld [vmem:[%s1360_s1] sm:$0xff]   ;;  %v23_v2 = vld [vmem:[%s1359_s0 + $0x8] sm:$0xff]  ;;  %v24_v3 = vld [vmem:[%s1359_s0 + $0x10] sm:$0xff] }
   0x2   :  { %v22_v1 = vld [vmem:[%s1359_s0] sm:$0xff]  ;;  %978 = vmatprep.subr.bf16.mxu0 %v1079_v0  ;;  %v25_v5 = vld [vmem:[%s1359_s0 + $0x18] sm:$0xff]  ;;  %v27_v7 = vld [vmem:[%s1359_s0 + $0x28] sm:$0xff] }
   0x3   :  { %v54_v4 = vpack.c.bf16 %v23_v2, %v22_v1  ;;  %v26_v6 = vld [vmem:[%s1359_s0 + $0x20] sm:$0xff]  ;;  %979 = vmatpush3.bf16.msra.mxu0 %v1079_v0  ;;  %v55_v8 = vpack.c.bf16 %v25_v5, %v24_v3  ;;  %v28_v10 = vld [vmem:[%s1359_s0 + $0x30] sm:$0xff]  ;;  %v29_v11 = vld [vmem:[%s1359_s0 + $0x38] sm:$0xff] }
   0x4   :  { %v56_v9 = vpack.c.bf16 %v27_v7, %v26_v6  ;;  %v30_v12 = vld [vmem:[%s1359_s0 + $0x40] sm:$0xff]  ;;  %v31_v13 = vld [vmem:[%s1359_s0 + $0x48] sm:$0xff]  ;;  %v57_v14 = vpack.c.bf16 %v29_v11, %v28_v10  ;;  %v1080_v16 = vld [vmem:[%s1362_s3 + $0x38] sm:$0xff]  }
   0x5   :  { %980 = vmatprep.mubr.msk.bf16.mxu0 %vm85_vm0, %v54_v4  ;;  %v58_v15 = vpack.c.bf16 %v31_v13, %v30_v12  ;;  %v32_v17 = vld [vmem:[%s1359_s0 + $0x50] sm:$0xff]  ;;  %v33_v18 = vld [vmem:[%s1359_s0 + $0x58] sm:$0xff]  ;;  %v34_v20 = vld [vmem:[%s1359_s0 + $0x60] sm:$0xff]  ;;  %1012 = vmatprep.subr.bf16.mxu0 %v1080_v16 }
   0x6   :  { %981 = vmatmul.mubr.msk.bf16.vlgmr.msra.gmra.mxu0 %vm85_vm0, %v55_v8  ;;  %v1081_v19 = vld [vmem:[%s1362_s3 + $0x30] sm:$0xff]   ;;  %v35_v21 = vld [vmem:[%s1359_s0 + $0x68] sm:$0xff]  ;;  %1060 = vmatprep.subr.bf16.mxu1 %v1080_v16  ;;  %v59_v23 = vpack.c.bf16 %v33_v18, %v32_v17 }
   0x7   :  { %984 = vmatprep.mubr.msk.bf16.mxu0 %vm85_vm0, %v56_v9  ;;  %1013 = vmatpush3.bf16.msra.mxu0 %v1080_v16  ;;  %v1082_v22 = vld [vmem:[%s1362_s3 + $0x28] sm:$0xff]  }
   0x8   :  { %1014 = vmatprep.subr.bf16.mxu0 %v1081_v19  ;;  %1068 = vmatpush3.bf16.msra.mxu1 %v1080_v16 }
   0x9   :  { %1061 = vmatprep.subr.bf16.mxu1 %v1081_v19 }
   0xe   :  { %985 = vmatmul.mubr.msk.bf16.gmra.mxu0 %vm85_vm0, %v57_v14 }
   0xf   :  { %988 = vmatprep.mubr.msk.bf16.mxu0 %vm85_vm0, %v58_v15 }
  0x10   :  { %10 = vsyncpa [#allocation3], 0  ;;  %v60_v24 = vpack.c.bf16 %v35_v21, %v34_v20  ;;  %1015 = vmatpush3.bf16.msra.mxu0 %v1081_v19  ;;  %v1083_v25 = vld [vmem:[%s1362_s3 + $0x20] sm:$0xff]   ;;  %1069 = vmatpush3.bf16.msra.mxu1 %v1081_v19  ;;  %v36_v26 = vld [vmem:[%s1359_s0 + $0x70] sm:$0xff] }
  0x11   :  { %1016 = vmatprep.subr.bf16.mxu0 %v1082_v22  ;;  %1062 = vmatprep.subr.bf16.mxu1 %v1082_v22  ;;  %v37_v27 = vld [vmem:[%s1359_s0 + $0x78] sm:$0xff]  ;;  %v38_v28 = vld [vmem:[%s1359_s0 + $0x80] sm:$0xff]  ;;  %v39_v29 = vld [vmem:[%s1359_s0 + $0x88] sm:$0xff] }
  0x12   :  { %v1084_v30 = vld [vmem:[%s1362_s3 + $0x18] sm:$0xff]   ;;  %v61_v31 = vpack.c.bf16 %v37_v27, %v36_v26  ;;  %v62_v32 = vpack.c.bf16 %v39_v29, %v38_v28  ;;  %v40_v33 = vld [vmem:[%s1359_s0 + $0x90] sm:$0xff]  ;;  %v42_v35 = vld [vmem:[%s1359_s0 + $0xa0] sm:$0xff] }
  0x13   :  { %v41_v34 = vld [vmem:[%s1359_s0 + $0x98] sm:$0xff]  ;;  %v43_v36 = vld [vmem:[%s1359_s0 + $0xa8] sm:$0xff]  ;;  %v44_v39 = vld [vmem:[%s1359_s0 + $0xb0] sm:$0xff] }
  0x14   :  { %1017 = vmatpush3.bf16.msra.mxu0 %v1082_v22  ;;  %1070 = vmatpush3.bf16.msra.mxu1 %v1082_v22  ;;  %v63_v37 = vpack.c.bf16 %v41_v34, %v40_v33  ;;  %v64_v38 = vpack.c.bf16 %v43_v36, %v42_v35  ;;  %v45_v40 = vld [vmem:[%s1359_s0 + $0xb8] sm:$0xff]  ;;  %v46_v41 = vld [vmem:[%s1359_s0 + $0xc0] sm:$0xff]  ;;  %v47_v42 = vld [vmem:[%s1359_s0 + $0xc8] sm:$0xff] }
  0x15   :  { %1018 = vmatprep.subr.bf16.mxu0 %v1083_v25  ;;  %1063 = vmatprep.subr.bf16.mxu1 %v1083_v25  ;;  %v65_v43 = vpack.c.bf16 %v45_v40, %v44_v39  ;;  %v66_v44 = vpack.c.bf16 %v47_v42, %v46_v41  ;;  %v48_v45 = vld [vmem:[%s1359_s0 + $0xd0] sm:$0xff]  ;;  %v49_v46 = vld [vmem:[%s1359_s0 + $0xd8] sm:$0xff]  ;;  %v50_v47 = vld [vmem:[%s1359_s0 + $0xe0] sm:$0xff] }
  0x16   :  { %989 = vmatmul.mubr.msk.bf16.gmra.mxu0 %vm85_vm0, %v59_v23  ;;  %v51_v48 = vld [vmem:[%s1359_s0 + $0xe8] sm:$0xff]  ;;  %v67_v49 = vpack.c.bf16 %v49_v46, %v48_v45  ;;  %v52_v51 = vld [vmem:[%s1359_s0 + $0xf0] sm:$0xff]  ;;  %v53_v52 = vld [vmem:[%s1359_s0 + $0xf8] sm:$0xff] }
  0x17   :  { %992 = vmatprep.mubr.msk.bf16.mxu0 %vm85_vm0, %v60_v24  ;;  %v68_v50 = vpack.c.bf16 %v51_v48, %v50_v47  ;;  %v69_v53 = vpack.c.bf16 %v53_v52, %v52_v51  ;;  %v1085_v54 = vld [vmem:[%s1362_s3 + $0x10] sm:$0xff]   ;;  %v1086_v55 = vld [vmem:[%s1362_s3 + $0x8] sm:$0xff]   ;;  %v1087_v56 = vld [vmem:[%s1362_s3] sm:$0xff]  }
  0x18   :  { %1019 = vmatpush3.bf16.msra.mxu0 %v1083_v25  ;;  %1071 = vmatpush3.bf16.msra.mxu1 %v1083_v25  ;;  %v1285_v59 = vld [vmem:[%s1361_s2] ss:$0 sm:$0xff] }
  0x19   :  { %1020 = vmatprep.subr.bf16.mxu0 %v1084_v30  ;;  %1064 = vmatprep.subr.bf16.mxu1 %v1084_v30 }
  0x1c   :  { %1021 = vmatpush3.bf16.msra.mxu0 %v1084_v30  ;;  %1072 = vmatpush3.bf16.msra.mxu1 %v1084_v30 }
  0x1d   :  { %1022 = vmatprep.subr.bf16.mxu0 %v1085_v54  ;;  %1065 = vmatprep.subr.bf16.mxu1 %v1085_v54 }
  0x1e   :  { %993 = vmatmul.mubr.msk.bf16.gmra.mxu0 %vm85_vm0, %v61_v31 }
  0x1f   :  { %996 = vmatprep.mubr.msk.bf16.mxu0 %vm85_vm0, %v62_v32 }
  0x20   :  { %1023 = vmatpush3.bf16.msra.mxu0 %v1085_v54  ;;  %1073 = vmatpush3.bf16.msra.mxu1 %v1085_v54 }
  0x21   :  { %1024 = vmatprep.subr.bf16.mxu0 %v1086_v55  ;;  %1066 = vmatprep.subr.bf16.mxu1 %v1086_v55 }
  0x24   :  { %1025 = vmatpush3.bf16.msra.mxu0 %v1086_v55  ;;  %1074 = vmatpush3.bf16.msra.mxu1 %v1086_v55 }
  0x25   :  { %1026 = vmatprep.subr.bf16.mxu0 %v1087_v56  ;;  %1067 = vmatprep.subr.bf16.mxu1 %v1087_v56 }
  0x26   :  { %997 = vmatmul.mubr.msk.bf16.gmra.mxu0 %vm85_vm0, %v63_v37 }
  0x27   :  { %1000 = vmatprep.mubr.msk.bf16.mxu0 %vm85_vm0, %v64_v38 }
  0x28   :  { %1027 = vmatpush3.bf16.msra.mxu0 %v1087_v56  ;;  %1075 = vmatpush3.bf16.msra.mxu1 %v1087_v56 }
  0x2e   :  { %1001 = vmatmul.mubr.msk.bf16.gmra.mxu0 %vm85_vm0, %v65_v43 }
  0x2f   :  { %1004 = vmatprep.mubr.msk.bf16.mxu0 %vm85_vm0, %v66_v44 }
  0x36   :  { %1005 = vmatmul.mubr.msk.bf16.gmra.mxu0 %vm85_vm0, %v67_v49 }
  0x37   :  { %1008 = vmatprep.mubr.msk.bf16.mxu0 %vm85_vm0, %v68_v50 }
  0x3e   :  { %1009 = vmatmul.mubr.msk.bf16.gmra.mxu0 %vm85_vm0, %v69_v53 }
  0xc6   :  { %v982_v57 = vpop.f32.mrf.mxu0 }
  0xc7   :  { %v177_v63 = vadd.f32 %v982_v57, %v1285_v59 }
  0xc8   :  { %v168_v58 = vpop.f32.mrf.mxu0 }
  0xc9   :  { %v169_v61 = vadd.f32 %v1285_v59, %v168_v58  ;;  %v297_v6 = vmax.f32 %v177_v63, 0.0 }
  0xca   :  { %v983_v60 = vpop.f32.mrf.mxu0 }
  0xcb   :  { %v180_v62 = vadd.f32 %v983_v60, %v1285_v59  ;;  %v295_v4 = vmax.f32 %v169_v61, 0.0 }
  0xcc   :  { %v171_v0 = vpop.f32.mrf.mxu0 }
  0xcd   :  { %v172_v1 = vadd.f32 %v1285_v59, %v171_v0  ;;  %v298_v2 = vmax.f32 %v180_v62, 0.0 }
  0xce   :  { %v986_v3 = vpop.f32.mrf.mxu0 }
  0xcf   :  { %v296_v5 = vmax.f32 %v172_v1, 0.0  ;;  %v328_v9 = vpack.c.bf16 %v298_v2, %v297_v6  ;;  %v193_v13 = vadd.f32 %v986_v3, %v1285_v59 }
  0xd0   :  { %v184_v7 = vpop.f32.mrf.mxu0 }
  0xd1   :  { %v327_v8 = vpack.c.bf16 %v296_v5, %v295_v4  ;;  %v185_v11 = vadd.f32 %v1285_v59, %v184_v7  ;;  %v301_v20 = vmax.f32 %v193_v13, 0.0 }
  0xd2   :  { %v987_v10 = vpop.f32.mrf.mxu0 }
  0xd3   :  { %v196_v12 = vadd.f32 %v987_v10, %v1285_v59  ;;  %1028 = vmatprep.mubr.bf16.mxu0 %v327_v8  ;;  %v299_v18 = vmax.f32 %v185_v11, 0.0 }
  0xd4   :  { %v187_v14 = vpop.f32.mrf.mxu0  ;;  %1029 = vmatmul.mubr.bf16.vlgmr.msra.gmra.mxu0 %v328_v9 }
  0xd5   :  { %v188_v15 = vadd.f32 %v1285_v59, %v187_v14  ;;  %v302_v16 = vmax.f32 %v196_v12, 0.0 }
  0xd6   :  { %v990_v17 = vpop.f32.mrf.mxu0 }
  0xd7   :  { %v300_v19 = vmax.f32 %v188_v15, 0.0  ;;  %v330_v23 = vpack.c.bf16 %v302_v16, %v301_v20  ;;  %v209_v27 = vadd.f32 %v990_v17, %v1285_v59 }
  0xd8   :  { %v200_v21 = vpop.f32.mrf.mxu0 }
  0xd9   :  { %v329_v22 = vpack.c.bf16 %v300_v19, %v299_v18  ;;  %v201_v25 = vadd.f32 %v1285_v59, %v200_v21  ;;  %v305_v34 = vmax.f32 %v209_v27, 0.0 }
  0xda   :  { %v991_v24 = vpop.f32.mrf.mxu0 }
  0xdb   :  { %v212_v26 = vadd.f32 %v991_v24, %v1285_v59  ;;  %1032 = vmatprep.mubr.bf16.mxu1 %v329_v22  ;;  %v303_v32 = vmax.f32 %v201_v25, 0.0 }
  0xdc   :  { %v203_v28 = vpop.f32.mrf.mxu0  ;;  %1033 = vmatmul.mubr.bf16.vlgmr.msra.gmra.mxu1 %v330_v23 }
  0xdd   :  { %v204_v29 = vadd.f32 %v1285_v59, %v203_v28  ;;  %v306_v30 = vmax.f32 %v212_v26, 0.0 }
  0xde   :  { %v994_v31 = vpop.f32.mrf.mxu0 }
  0xdf   :  { %v304_v33 = vmax.f32 %v204_v29, 0.0  ;;  %v332_v37 = vpack.c.bf16 %v306_v30, %v305_v34  ;;  %v225_v41 = vadd.f32 %v994_v31, %v1285_v59 }
  0xe0   :  { %v216_v35 = vpop.f32.mrf.mxu0 }
  0xe1   :  { %v331_v36 = vpack.c.bf16 %v304_v33, %v303_v32  ;;  %v217_v39 = vadd.f32 %v1285_v59, %v216_v35  ;;  %v309_v48 = vmax.f32 %v225_v41, 0.0 }
  0xe2   :  { %v995_v38 = vpop.f32.mrf.mxu0 }
  0xe3   :  { %v228_v40 = vadd.f32 %v995_v38, %v1285_v59  ;;  %1036 = vmatprep.mubr.bf16.mxu1 %v331_v36  ;;  %v307_v46 = vmax.f32 %v217_v39, 0.0 }
  0xe4   :  { %v219_v42 = vpop.f32.mrf.mxu0  ;;  %1037 = vmatmul.mubr.bf16.gmra.mxu1 %v332_v37 }
  0xe5   :  { %v220_v43 = vadd.f32 %v1285_v59, %v219_v42  ;;  %v310_v44 = vmax.f32 %v228_v40, 0.0 }
  0xe6   :  { %v998_v45 = vpop.f32.mrf.mxu0 }
  0xe7   :  { %v308_v47 = vmax.f32 %v220_v43, 0.0  ;;  %v334_v51 = vpack.c.bf16 %v310_v44, %v309_v48  ;;  %v241_v55 = vadd.f32 %v998_v45, %v1285_v59  ;;  %v1322_v44 = vld [vmem:[%s1363_s4] ss:$0 sm:$0xff]  ;;  %s1110_s4 = smov [#allocation2]  }
  0xe8   :  { %v232_v49 = vpop.f32.mrf.mxu0  ;;  %s740_s23 = sshll.u32 %s1110_s4, 4  ;;  %s741_s23 = int_to_ptr.vmem [resolvable:$true] %s740_s23 }
  0xe9   :  { %v333_v50 = vpack.c.bf16 %v308_v47, %v307_v46  ;;  %v233_v53 = vadd.f32 %v1285_v59, %v232_v49  ;;  %v313_v63 = vmax.f32 %v241_v55, 0.0  ;;  %s1088_s24 = scalar_lea.vmem %s741_s23, 2048  ;;  %p1093_p1 = scmp.lt.s32.totalorder %s741_s23, %s741_s23 }
  0xea   :  { %v999_v52 = vpop.f32.mrf.mxu0  ;;  %p1089_p0 = scmp.ne.s32.totalorder %s741_s23, %s1088_s24  ;;  %p1094_p2 = scmp.lt.s32.totalorder %s1088_s24, %s1088_s24 }
  0xeb   :  { %v244_v54 = vadd.f32 %v999_v52, %v1285_v59  ;;  %1040 = vmatprep.mubr.bf16.mxu1 %v333_v50  ;;  %v311_v61 = vmax.f32 %v233_v53, 0.0 }
  0xec   :  { %v235_v56 = vpop.f32.mrf.mxu0  ;;  %1041 = vmatmul.mubr.bf16.gmra.mxu1 %v334_v51  ;;  %p1095_p3 = por %p1094_p2, %p1093_p1 }
  0xed   :  { %v236_v57 = vadd.f32 %v1285_v59, %v235_v56  ;;  %v314_v58 = vmax.f32 %v244_v54, 0.0 }
  0xee   :  { %v1002_v60 = vpop.f32.mrf.mxu0  ;;  %p1096_p4 = pnand %p1095_p3, %p1089_p0 }
  0xef   :  { %v312_v62 = vmax.f32 %v236_v57, 0.0  ;;  %v336_v2 = vpack.c.bf16 %v314_v58, %v313_v63  ;;  %v257_v6 = vadd.f32 %v1002_v60, %v1285_v59 }
  0xf0   :  { %v248_v0 = vpop.f32.mrf.mxu0 }
  0xf1   :  { %v335_v1 = vpack.c.bf16 %v312_v62, %v311_v61  ;;  %v249_v4 = vadd.f32 %v1285_v59, %v248_v0  ;;  %v317_v13 = vmax.f32 %v257_v6, 0.0 }
  0xf2   :  { %v1003_v3 = vpop.f32.mrf.mxu0 }
  0xf3   :  { %v260_v5 = vadd.f32 %v1003_v3, %v1285_v59  ;;  %1044 = vmatprep.mubr.bf16.mxu1 %v335_v1  ;;  %v315_v11 = vmax.f32 %v249_v4, 0.0 }
  0xf4   :  { %v251_v7 = vpop.f32.mrf.mxu0  ;;  %1045 = vmatmul.mubr.bf16.gmra.mxu1 %v336_v2 }
  0xf5   :  { %v252_v8 = vadd.f32 %v1285_v59, %v251_v7  ;;  %v318_v9 = vmax.f32 %v260_v5, 0.0 }
  0xf6   :  { %v1006_v10 = vpop.f32.mrf.mxu0 }
  0xf7   :  { %v316_v12 = vmax.f32 %v252_v8, 0.0  ;;  %v338_v16 = vpack.c.bf16 %v318_v9, %v317_v13  ;;  %v273_v20 = vadd.f32 %v1006_v10, %v1285_v59 }
  0xf8   :  { %v264_v14 = vpop.f32.mrf.mxu0 }
  0xf9   :  { %v337_v15 = vpack.c.bf16 %v316_v12, %v315_v11  ;;  %v265_v18 = vadd.f32 %v1285_v59, %v264_v14  ;;  %v321_v27 = vmax.f32 %v273_v20, 0.0 }
  0xfa   :  { %v1007_v17 = vpop.f32.mrf.mxu0 }
  0xfb   :  { %v276_v19 = vadd.f32 %v1007_v17, %v1285_v59  ;;  %1048 = vmatprep.mubr.bf16.mxu1 %v337_v15  ;;  %v319_v25 = vmax.f32 %v265_v18, 0.0 }
  0xfc   :  { %v267_v21 = vpop.f32.mrf.mxu0  ;;  %1049 = vmatmul.mubr.bf16.gmra.mxu1 %v338_v16 }
  0xfd   :  { %v268_v22 = vadd.f32 %v1285_v59, %v267_v21  ;;  %v322_v23 = vmax.f32 %v276_v19, 0.0 }
  0xfe   :  { %v1010_v24 = vpop.f32.mrf.mxu0 }
  0xff   :  { %v320_v26 = vmax.f32 %v268_v22, 0.0  ;;  %v340_v30 = vpack.c.bf16 %v322_v23, %v321_v27  ;;  %v289_v34 = vadd.f32 %v1010_v24, %v1285_v59 }
 0x100   :  { %v280_v28 = vpop.f32.mrf.mxu0 }
 0x101   :  { %v339_v29 = vpack.c.bf16 %v320_v26, %v319_v25  ;;  %v281_v32 = vadd.f32 %v1285_v59, %v280_v28  ;;  %v325_v40 = vmax.f32 %v289_v34, 0.0 }
 0x102   :  { %v1011_v31 = vpop.f32.mrf.mxu0 }
 0x103   :  { %v292_v33 = vadd.f32 %v1011_v31, %v1285_v59  ;;  %1052 = vmatprep.mubr.bf16.mxu1 %v339_v29  ;;  %v323_v38 = vmax.f32 %v281_v32, 0.0 }
 0x104   :  { %v283_v35 = vpop.f32.mrf.mxu0  ;;  %1053 = vmatmul.mubr.bf16.gmra.mxu1 %v340_v30 }
 0x105   :  { %v284_v36 = vadd.f32 %v1285_v59, %v283_v35  ;;  %v326_v37 = vmax.f32 %v292_v33, 0.0 }
 0x107   :  { %v324_v39 = vmax.f32 %v284_v36, 0.0  ;;  %v342_v42 = vpack.c.bf16 %v326_v37, %v325_v40 }
 0x109   :  { %v341_v41 = vpack.c.bf16 %v324_v39, %v323_v38 }
 0x10b   :  { %1056 = vmatprep.mubr.bf16.mxu1 %v341_v41 }
 0x10c   :  { %1057 = vmatmul.mubr.bf16.gmra.mxu1 %v342_v42 }
 0x194   :  { %v1030_v43 = vpop.f32.mrf.mxu0 }
 0x195   :  { %v457_v47 = vadd.f32 %v1030_v43, %v1322_v44 }
 0x196   :  { %v448_v45 = vpop.f32.mrf.mxu0 }
 0x197   :  { %v449_v49 = vadd.f32 %v1322_v44, %v448_v45 }
 0x198   :  { %v1031_v46 = vpop.f32.mrf.mxu0 }
 0x199   :  { %v460_v59 = vadd.f32 %v1031_v46, %v1322_v44 }
 0x19a   :  { %v451_v48 = vpop.f32.mrf.mxu0 }
 0x19b   :  { %v850_v50 = vpack.c.bf16 %v460_v59, %v457_v47  ;;  %v452_v51 = vadd.f32 %v1322_v44, %v451_v48 }
 0x19c   :  { %v1034_v52 = vpop.f32.mrf.mxu1 }
 0x19d   :  { %922 = vst [vmem:[#allocation2 + $0x8] sm:$0xff] %v850_v50   ;;  %v845_v53 = vpack.c.bf16 %v452_v51, %v449_v49  ;;  %v473_v56 = vadd.f32 %v1034_v52, %v1322_v44 }
 0x19e   :  { %v464_v54 = vpop.f32.mrf.mxu1 }
 0x19f   :  { %846 = vst [vmem:[#allocation2] sm:$0xff] %v845_v53   ;;  %v465_v60 = vadd.f32 %v1322_v44, %v464_v54 }
 0x1a0   :  { %v1035_v55 = vpop.f32.mrf.mxu1 }
 0x1a1   :  { %v476_v57 = vadd.f32 %v1035_v55, %v1322_v44 }
 0x1a2   :  { %v467_v58 = vpop.f32.mrf.mxu1 }
 0x1a3   :  { %v860_v61 = vpack.c.bf16 %v476_v57, %v473_v56  ;;  %v468_v62 = vadd.f32 %v1322_v44, %v467_v58 }
 0x1a4   :  { %v1038_v63 = vpop.f32.mrf.mxu1 }
 0x1a5   :  { %924 = vst [vmem:[#allocation2 + $0x18] sm:$0xff] %v860_v61   ;;  %v855_v0 = vpack.c.bf16 %v468_v62, %v465_v60  ;;  %v489_v3 = vadd.f32 %v1038_v63, %v1322_v44 }
 0x1a6   :  { %v480_v1 = vpop.f32.mrf.mxu1 }
 0x1a7   :  { %923 = vst [vmem:[#allocation2 + $0x10] sm:$0xff] %v855_v0   ;;  %v481_v6 = vadd.f32 %v1322_v44, %v480_v1 }
 0x1a8   :  { %v1039_v2 = vpop.f32.mrf.mxu1 }
 0x1a9   :  { %v492_v4 = vadd.f32 %v1039_v2, %v1322_v44 }
 0x1aa   :  { %v483_v5 = vpop.f32.mrf.mxu1 }
 0x1ab   :  { %v870_v7 = vpack.c.bf16 %v492_v4, %v489_v3  ;;  %v484_v8 = vadd.f32 %v1322_v44, %v483_v5 }
 0x1ac   :  { %v1042_v9 = vpop.f32.mrf.mxu1 }
 0x1ad   :  { %926 = vst [vmem:[#allocation2 + $0x28] sm:$0xff] %v870_v7   ;;  %v865_v10 = vpack.c.bf16 %v484_v8, %v481_v6  ;;  %v505_v13 = vadd.f32 %v1042_v9, %v1322_v44 }
 0x1ae   :  { %v496_v11 = vpop.f32.mrf.mxu1 }
 0x1af   :  { %925 = vst [vmem:[#allocation2 + $0x20] sm:$0xff] %v865_v10   ;;  %v497_v16 = vadd.f32 %v1322_v44, %v496_v11 }
 0x1b0   :  { %v1043_v12 = vpop.f32.mrf.mxu1 }
 0x1b1   :  { %v508_v14 = vadd.f32 %v1043_v12, %v1322_v44 }
 0x1b2   :  { %v499_v15 = vpop.f32.mrf.mxu1 }
 0x1b3   :  { %v880_v17 = vpack.c.bf16 %v508_v14, %v505_v13  ;;  %v500_v18 = vadd.f32 %v1322_v44, %v499_v15 }
 0x1b4   :  { %v1046_v19 = vpop.f32.mrf.mxu1 }
 0x1b5   :  { %928 = vst [vmem:[#allocation2 + $0x38] sm:$0xff] %v880_v17   ;;  %v875_v20 = vpack.c.bf16 %v500_v18, %v497_v16  ;;  %v521_v23 = vadd.f32 %v1046_v19, %v1322_v44 }
 0x1b6   :  { %v512_v21 = vpop.f32.mrf.mxu1 }
 0x1b7   :  { %927 = vst [vmem:[#allocation2 + $0x30] sm:$0xff] %v875_v20   ;;  %v513_v26 = vadd.f32 %v1322_v44, %v512_v21 }
 0x1b8   :  { %v1047_v22 = vpop.f32.mrf.mxu1 }
 0x1b9   :  { %v524_v24 = vadd.f32 %v1047_v22, %v1322_v44 }
 0x1ba   :  { %v515_v25 = vpop.f32.mrf.mxu1 }
 0x1bb   :  { %v890_v27 = vpack.c.bf16 %v524_v24, %v521_v23  ;;  %v516_v28 = vadd.f32 %v1322_v44, %v515_v25 }
 0x1bc   :  { %v1050_v29 = vpop.f32.mrf.mxu1 }
 0x1bd   :  { %930 = vst [vmem:[#allocation2 + $0x48] sm:$0xff] %v890_v27   ;;  %v885_v30 = vpack.c.bf16 %v516_v28, %v513_v26  ;;  %v537_v33 = vadd.f32 %v1050_v29, %v1322_v44 }
 0x1be   :  { %v528_v31 = vpop.f32.mrf.mxu1 }
 0x1bf   :  { %929 = vst [vmem:[#allocation2 + $0x40] sm:$0xff] %v885_v30   ;;  %v529_v36 = vadd.f32 %v1322_v44, %v528_v31 }
 0x1c0   :  { %v1051_v32 = vpop.f32.mrf.mxu1 }
 0x1c1   :  { %v540_v34 = vadd.f32 %v1051_v32, %v1322_v44 }
 0x1c2   :  { %v531_v35 = vpop.f32.mrf.mxu1 }
 0x1c3   :  { %v900_v37 = vpack.c.bf16 %v540_v34, %v537_v33  ;;  %v532_v38 = vadd.f32 %v1322_v44, %v531_v35 }
 0x1c4   :  { %v1054_v39 = vpop.f32.mrf.mxu1 }
 0x1c5   :  { %932 = vst [vmem:[#allocation2 + $0x58] sm:$0xff] %v900_v37   ;;  %v895_v40 = vpack.c.bf16 %v532_v38, %v529_v36  ;;  %v553_v43 = vadd.f32 %v1054_v39, %v1322_v44 }
 0x1c6   :  { %v544_v41 = vpop.f32.mrf.mxu1 }
 0x1c7   :  { %931 = vst [vmem:[#allocation2 + $0x50] sm:$0xff] %v895_v40   ;;  %v545_v47 = vadd.f32 %v1322_v44, %v544_v41 }
 0x1c8   :  { %v1055_v42 = vpop.f32.mrf.mxu1 }
 0x1c9   :  { %v556_v45 = vadd.f32 %v1055_v42, %v1322_v44 }
 0x1ca   :  { %v547_v46 = vpop.f32.mrf.mxu1 }
 0x1cb   :  { %v910_v59 = vpack.c.bf16 %v556_v45, %v553_v43  ;;  %v548_v48 = vadd.f32 %v1322_v44, %v547_v46 }
 0x1cc   :  { %v1058_v49 = vpop.f32.mrf.mxu1 }
 0x1cd   :  { %934 = vst [vmem:[#allocation2 + $0x68] sm:$0xff] %v910_v59   ;;  %v905_v50 = vpack.c.bf16 %v548_v48, %v545_v47  ;;  %v569_v53 = vadd.f32 %v1058_v49, %v1322_v44 }
 0x1ce   :  { %v560_v51 = vpop.f32.mrf.mxu1 }
 0x1cf   :  { %933 = vst [vmem:[#allocation2 + $0x60] sm:$0xff] %v905_v50   ;;  %v561_v56 = vadd.f32 %v1322_v44, %v560_v51 }
 0x1d0   :  { %v1059_v52 = vpop.f32.mrf.mxu1 }
 0x1d1   :  { %v572_v54 = vadd.f32 %v1059_v52, %v1322_v44 }
 0x1d2   :  { %v563_v55 = vpop.f32.mrf.mxu1 }
 0x1d3   :  { %v920_v57 = vpack.c.bf16 %v572_v54, %v569_v53  ;;  %v564_v58 = vadd.f32 %v1322_v44, %v563_v55 }
 0x1d5   :  { %936 = vst [vmem:[#allocation2 + $0x78] sm:$0xff] %v920_v57   ;;  %v915_v60 = vpack.c.bf16 %v564_v58, %v561_v56 }
 0x1d7   :  { %935 = vst [vmem:[#allocation2 + $0x70] sm:$0xff] %v915_v60  }
 0x1d8   :  { %1099 = shalt.err (!%p1096_p4)
}
 0x1d9   :  { %s1111_s25 = smov 64   ;;  %s1112_s26 = smov 4  }
 0x1da   :  { %746 = dma.vmem_to_hbm [thread:$0]  %s741_s23, 2048, %s1364_s5, [#allocation3], %s1111_s25, %s1111_s25, %s1112_s26  }
 0x1db   :  { %1108 = dma.done.wait [#allocation3], 2048  }
 0x1dc   :  { %1109 = vsyncadd [#allocation3], 4294965248 }
 0x1dd   :  { %750 = vsyncpa [#allocation3], 1 }

</bundles_post_ra>
